<compile_context>
chip_gen: v5e
topology: v5e:2x2
jax: 0.10.0
libtpu: 0.0.40
codegen_flags: <defaults>
</compile_context>

<pallas_src>
import functools

import jax
import jax.numpy as jnp
import numpy as np
from jax import lax
from jax.experimental import pallas as pl
from jax.experimental.pallas import tpu as pltpu


def _pick_block(batch, cap=4096):
    """Largest batch tile <= cap that divides `batch` and keeps tiling legal."""
    if batch <= cap:
        return batch                       # single block == full array dims
    for tb in (4096, 2048, 1024, 512, 256, 128, 64, 32, 16, 8):
        if batch % tb == 0:
            return tb
    return batch                           # fallback: monolithic block


# ---------------------------------------------------------------------------
# Kernel 1: mean cross-entropy from logits + int32 labels   (epoch <= es)
# ---------------------------------------------------------------------------
def _ce_kernel(labels_ref, logits_ref, loss_ref, acc_ref, *, batch):
    i = pl.program_id(0)

    @pl.when(i == 0)
    def _init():
        acc_ref[...] = jnp.zeros_like(acc_ref)

    logits = logits_ref[...]                                    # (tb, C) f32
    labels = labels_ref[...]                                    # (tb, 1) i32
    m = jnp.max(logits, axis=1, keepdims=True)
    z = logits - m
    lse = jnp.log(jnp.sum(jnp.exp(z), axis=1, keepdims=True))   # (tb, 1)
    cls = lax.broadcasted_iota(jnp.int32, z.shape, 1)           # (tb, C)
    picked = jnp.sum(jnp.where(cls == labels, z, 0.0), axis=1, keepdims=True)
    # (tb, 1) vreg accumulator; no per-step reduce over the batch axis.
    acc_ref[...] += lse - picked                                # -log_softmax[label]

    @pl.when(i == pl.num_programs(0) - 1)
    def _finish():
        loss_ref[0, 0] = jnp.sum(acc_ref[...]) * (1.0 / batch)  # single final reduce


@functools.partial(jax.jit, static_argnames=("tb",))
def ce_loss_pallas(logits, labels, *, tb):
    B, C = logits.shape
    labels2d = labels.astype(jnp.int32).reshape(B, 1)
    loss = pl.pallas_call(
        functools.partial(_ce_kernel, batch=B),
        out_shape=jax.ShapeDtypeStruct((1, 1), jnp.float32),
        grid_spec=pltpu.PrefetchScalarGridSpec(
            num_scalar_prefetch=0,
            grid=(B // tb,),
            in_specs=[
                pl.BlockSpec((tb, 1), lambda i: (i, 0)),        # int labels
                pl.BlockSpec((tb, C), lambda i: (i, 0)),        # logits blocks
            ],
            out_specs=pl.BlockSpec(memory_space=pltpu.MemorySpace.SMEM),
            scratch_shapes=[pltpu.VMEM((tb, 1), jnp.float32)],  # loss accumulator
        ),
        compiler_params=pltpu.CompilerParams(
            dimension_semantics=("arbitrary",)),
    )(labels2d, logits)
    return loss[0, 0]


# ---------------------------------------------------------------------------
# Kernel 2: SELC branch (epoch > es)
#   gather soft_labels[index] -> momentum update -> soft CE -> scatter in place
# ---------------------------------------------------------------------------
def _selc_kernel(idx_ref, logits_ref, soft_in_hbm, soft_out_hbm, loss_ref,
                 soft_buf, copy_sem, acc_ref, *, momentum, batch, tb):
    i = pl.program_id(0)
    base = i * tb
    unroll = max(1, min(8, tb))            # partial unroll of DMA-issue loops

    @pl.when(i == 0)
    def _init():
        acc_ref[...] = jnp.zeros_like(acc_ref)

    # -- 1. issue row gathers: soft_labels[index[base+r]] -> soft_buf[r] -----
    def _start_gather(r, c):
        row = idx_ref[base + r]
        pltpu.make_async_copy(soft_in_hbm.at[pl.ds(row, 1)],
                              soft_buf.at[pl.ds(r, 1)],
                              copy_sem.at[0]).start()
        return c
    lax.fori_loop(0, tb, _start_gather, 0, unroll=unroll)

    # -- 2. softmax / log-softmax on the logits block (overlaps gather DMAs) -
    logits = logits_ref[...]                       # (tb, C) f32
    m = jnp.max(logits, axis=1, keepdims=True)
    z = logits - m
    e = jnp.exp(z)
    s = jnp.sum(e, axis=1, keepdims=True)
    logp = z - jnp.log(s)                          # single log(s), reused
    p = e * (1.0 / s)                              # tb exact divides + tb*C muls

    # -- 3. ONE aggregated wait for all gathered bytes ------------------------
    # DMA semaphores count bytes; this (tb, C) descriptor drains exactly the
    # total signalled by the tb single-row copies started in step 1 (size-only
    # semaphore accounting: the wait descriptor's src/dst need not match the
    # started copies).  Requires tb <= N (asserted in the wrapper).
    pltpu.make_async_copy(soft_in_hbm.at[pl.ds(0, tb)], soft_buf,
                          copy_sem.at[0]).wait()

    new_soft = momentum * soft_buf[...] + (1.0 - momentum) * p
    soft_buf[...] = new_soft
    acc_ref[...] += -jnp.sum(logp * new_soft, axis=1, keepdims=True)   # (tb, 1)

    # -- 4. scatter updated rows back to HBM in place (aliased output) -------
    def _start_scatter(r, c):
        row = idx_ref[base + r]
        pltpu.make_async_copy(soft_buf.at[pl.ds(r, 1)],
                              soft_out_hbm.at[pl.ds(row, 1)],
                              copy_sem.at[1]).start()
        return c
    lax.fori_loop(0, tb, _start_scatter, 0, unroll=unroll)

    # ONE aggregated wait for the scattered bytes (same accounting note).
    pltpu.make_async_copy(soft_buf, soft_out_hbm.at[pl.ds(0, tb)],
                          copy_sem.at[1]).wait()

    @pl.when(i == pl.num_programs(0) - 1)
    def _finish():
        loss_ref[0, 0] = jnp.sum(acc_ref[...]) * (1.0 / batch)


@functools.partial(jax.jit, static_argnames=("momentum", "tb"),
                   donate_argnums=(2,))
def selc_loss_pallas(logits, index, soft_labels, *, momentum, tb):
    B, C = logits.shape
    N = soft_labels.shape[0]
    assert N >= tb, "aggregated-wait descriptor needs tb <= num dataset rows"
    new_soft, loss = pl.pallas_call(
        functools.partial(_selc_kernel, momentum=momentum, batch=B, tb=tb),
        out_shape=(
            jax.ShapeDtypeStruct((N, C), jnp.float32),   # updated in place
            jax.ShapeDtypeStruct((1, 1), jnp.float32),   # scalar loss (SMEM)
        ),
        grid_spec=pltpu.PrefetchScalarGridSpec(
            num_scalar_prefetch=0,
            grid=(B // tb,),
            in_specs=[
                pl.BlockSpec(memory_space=pltpu.MemorySpace.SMEM),  # index (B,) i32
                pl.BlockSpec((tb, C), lambda i: (i, 0)),            # logits blocks
                pl.BlockSpec(memory_space=pl.ANY),                  # soft_labels (HBM)
            ],
            out_specs=(
                pl.BlockSpec(memory_space=pl.ANY),                  # aliased soft_labels
                pl.BlockSpec(memory_space=pltpu.MemorySpace.SMEM),  # loss scalar
            ),
            scratch_shapes=[
                pltpu.VMEM((tb, C), jnp.float32),    # gathered / updated rows
                pltpu.SemaphoreType.DMA((2,)),       # [0] gather, [1] scatter
                pltpu.VMEM((tb, 1), jnp.float32),    # loss accumulator (vreg-shaped)
            ],
        ),
        input_output_aliases={2: 0},                 # soft_labels <-> output 0
        compiler_params=pltpu.CompilerParams(
            dimension_semantics=("arbitrary",)),
    )(index.astype(jnp.int32), logits, soft_labels)
    return new_soft, loss[0, 0]


# ---------------------------------------------------------------------------
# Functional SELCLoss "module"
# ---------------------------------------------------------------------------
class SELCLoss:
    """JAX/Pallas port of the PyTorch SELCLoss module (functional state)."""

    def __init__(self, labels, num_classes, es=10, momentum=0.9):
        self.num_classes = num_classes
        self.es = es
        self.momentum = float(momentum)
        self.soft_labels = jax.nn.one_hot(
            jnp.asarray(labels, dtype=jnp.int32), num_classes, dtype=jnp.float32)

    def forward(self, logits, labels, index, epoch):
        logits = logits.astype(jnp.float32)
        tb = _pick_block(logits.shape[0])
        if epoch <= self.es:
            return ce_loss_pallas(logits, labels, tb=tb)
        new_soft, loss = selc_loss_pallas(
            logits, index, self.soft_labels, momentum=self.momentum, tb=tb)
        self.soft_labels = new_soft          # old buffer was donated (in-place)
        return loss

    __call__ = forward


# ---------------------------------------------------------------------------
# Pure-JAX references for verification
# ---------------------------------------------------------------------------
def _ce_reference(logits, labels, num_classes):
    logp = jax.nn.log_softmax(logits, axis=1)
    onehot = jax.nn.one_hot(labels, num_classes, dtype=jnp.float32)
    return jnp.mean(-jnp.sum(logp * onehot, axis=1))


def _selc_reference(logits, soft_rows, momentum):
    logp = jax.nn.log_softmax(logits, axis=1)
    p = jax.nn.softmax(logits, axis=1)
    new_rows = momentum * soft_rows + (1.0 - momentum) * p
    loss = jnp.mean(-jnp.sum(logp * new_rows, axis=1))
    return loss, new_rows


# ---------------------------------------------------------------------------
# Demo
# ---------------------------------------------------------------------------
if __name__ == "__main__":
    key = jax.random.PRNGKey(0)
    N, B, C = 64, 8, 16          # dataset size, batch, num_classes
    ES, MOM = 10, 0.9

    k1, k2, k3 = jax.random.split(key, 3)
    dataset_labels = jax.random.randint(k1, (N,), 0, C, dtype=jnp.int32)
    logits = jax.random.normal(k2, (B, C), dtype=jnp.float32)
    index = jax.random.permutation(k3, N)[:B].astype(jnp.int32)   # unique per batch
    batch_labels = dataset_labels[index]

    crit = SELCLoss(dataset_labels, num_classes=C, es=ES, momentum=MOM)

    # --- branch 1: epoch <= es  (plain cross-entropy from int labels) ---
    ce = jax.block_until_ready(crit.forward(logits, batch_labels, index, epoch=5))
    ce_ref = _ce_reference(logits, batch_labels, C)
    assert np.allclose(np.asarray(ce), np.asarray(ce_ref), rtol=1e-5, atol=1e-5)

    # --- branch 2: epoch > es  (in-kernel gather + momentum + in-place scatter) ---
    full_before = np.asarray(crit.soft_labels)        # host copy (donation-safe)
    selc = jax.block_until_ready(crit.forward(logits, batch_labels, index, epoch=20))
    full_after = np.asarray(crit.soft_labels)

    idx_np = np.asarray(index)
    selc_ref, new_rows_ref = _selc_reference(
        logits, jnp.asarray(full_before[idx_np]), MOM)
    expected_full = full_before.copy()
    expected_full[idx_np] = np.asarray(new_rows_ref)

    assert np.allclose(np.asarray(selc), np.asarray(selc_ref), rtol=1e-5, atol=1e-5)
    assert np.allclose(full_after, expected_full, rtol=1e-5, atol=1e-5)

    print("KERNEL_OK")
</pallas_src>

<mosaic_0001>
module attributes {stable_mosaic.version = 11 : i64} {
  func.func @_ce_kernel(%arg0: i32, %arg1: memref<8x1xi32, #tpu.memory_space<vmem>>, %arg2: memref<8x16xf32, #tpu.memory_space<vmem>>, %arg3: memref<1x1xf32, #tpu.memory_space<smem>>, %arg4: memref<8x1xf32, #tpu.memory_space<vmem>>) attributes {dimension_semantics = [#tpu.dimension_semantics<arbitrary>], iteration_bounds = array<i64: 1>, scalar_prefetch = 0 : i64, scratch_operands = 1 : i64, tpu.core_type = #tpu.core_type<tc>, window_params = [{transform_indices = @transform_0, window_bounds = array<i64: 8, 1>}, {transform_indices = @transform_1, window_bounds = array<i64: 8, 16>}, {transform_indices = @transform_2, window_bounds = array<i64: 1, 1>}]} {
    %c0_i32 = arith.constant 0 : i32
    %0 = arith.cmpi eq, %arg0, %c0_i32 : i32
    %1 = arith.extui %0 : i1 to i32
    %c0_i32_0 = arith.constant 0 : i32
    %2 = arith.cmpi ne, %1, %c0_i32_0 : i32
    scf.if %2 {
      %cst_13 = arith.constant 0.000000e+00 : f32
      %27 = vector.broadcast %cst_13 : f32 to vector<8x1xf32>
      %c0_14 = arith.constant 0 : index
      %c0_15 = arith.constant 0 : index
      %28 = vector.load %arg4[%c0_14, %c0_15] : memref<8x1xf32, #tpu.memory_space<vmem>>, vector<8x1xf32>
      tpu.vector_store %arg4[%c0_14, %c0_15], %27 {strides = array<i32>} : memref<8x1xf32, #tpu.memory_space<vmem>>, vector<8x1xf32>,
    } else {
    }
    %c0 = arith.constant 0 : index
    %c0_1 = arith.constant 0 : index
    %3 = vector.load %arg2[%c0, %c0_1] : memref<8x16xf32, #tpu.memory_space<vmem>>, vector<8x16xf32>
    %c0_2 = arith.constant 0 : index
    %c0_3 = arith.constant 0 : index
    %4 = vector.load %arg1[%c0_2, %c0_3] : memref<8x1xi32, #tpu.memory_space<vmem>>, vector<8x1xi32>
    %cst = arith.constant dense<0xFF800000> : vector<8xf32>
    %5 = vector.multi_reduction <maximumf>, %3, %cst [1] : vector<8x16xf32> to vector<8xf32>
    %6 = vector.shape_cast %5 : vector<8xf32> to vector<8x1xf32>
    %7 = vector.broadcast %6 : vector<8x1xf32> to vector<8x16xf32>
    %8 = arith.subf %3, %7 : vector<8x16xf32>
    %9 = math.exp %8 : vector<8x16xf32>
    %cst_4 = arith.constant dense<0.000000e+00> : vector<8xf32>
    %10 = vector.multi_reduction <add>, %9, %cst_4 [1] : vector<8x16xf32> to vector<8xf32>
    %11 = vector.shape_cast %10 : vector<8xf32> to vector<8x1xf32>
    %12 = math.log %11 : vector<8x1xf32>
    %13 = tpu.iota {dimensions = array<i32: 1>} : vector<8x16xi32>
    %14 = vector.broadcast %4 : vector<8x1xi32> to vector<8x16xi32>
    %15 = arith.cmpi eq, %13, %14 : vector<8x16xi32>
    %cst_5 = arith.constant 0.000000e+00 : f32
    %16 = vector.broadcast %cst_5 : f32 to vector<8x16xf32>
    %17 = arith.select %15, %8, %16 : vector<8x16xi1>, vector<8x16xf32>
    %cst_6 = arith.constant dense<0.000000e+00> : vector<8xf32>
    %18 = vector.multi_reduction <add>, %17, %cst_6 [1] : vector<8x16xf32> to vector<8xf32>
    %19 = vector.shape_cast %18 : vector<8xf32> to vector<8x1xf32>
    %c0_7 = arith.constant 0 : index
    %c0_8 = arith.constant 0 : index
    %20 = vector.load %arg4[%c0_7, %c0_8] : memref<8x1xf32, #tpu.memory_space<vmem>>, vector<8x1xf32>
    %21 = arith.subf %12, %19 : vector<8x1xf32>
    %22 = arith.addf %20, %21 : vector<8x1xf32>
    %c0_9 = arith.constant 0 : index
    %c0_10 = arith.constant 0 : index
    %23 = vector.load %arg4[%c0_9, %c0_10] : memref<8x1xf32, #tpu.memory_space<vmem>>, vector<8x1xf32>
    tpu.vector_store %arg4[%c0_9, %c0_10], %22 {strides = array<i32>} : memref<8x1xf32, #tpu.memory_space<vmem>>, vector<8x1xf32>,
    %c0_i32_11 = arith.constant 0 : i32
    %24 = arith.cmpi eq, %arg0, %c0_i32_11 : i32
    %25 = arith.extui %24 : i1 to i32
    %c0_i32_12 = arith.constant 0 : i32
    %26 = arith.cmpi ne, %25, %c0_i32_12 : i32
    scf.if %26 {
      %c0_13 = arith.constant 0 : index
      %c0_14 = arith.constant 0 : index
      %27 = vector.load %arg4[%c0_13, %c0_14] : memref<8x1xf32, #tpu.memory_space<vmem>>, vector<8x1xf32>
      %28 = vector.shape_cast %27 : vector<8x1xf32> to vector<1x8x1xf32>
      %cst_15 = arith.constant dense<0.000000e+00> : vector<1xf32>
      %29 = vector.multi_reduction <add>, %28, %cst_15 [1, 2] : vector<1x8x1xf32> to vector<1xf32>
      %30 = vector.shape_cast %29 : vector<1xf32> to vector<1x1x1xf32>
      %31 = vector.extract %30[0, 0, 0] : f32 from vector<1x1x1xf32>
      %cst_16 = arith.constant 1.250000e-01 : f32
      %32 = arith.mulf %31, %cst_16 : f32
      %c0_17 = arith.constant 0 : index
      %c0_18 = arith.constant 0 : index
      %33 = memref.load %arg3[%c0_17, %c0_18] : memref<1x1xf32, #tpu.memory_space<smem>>
      memref.store %32, %arg3[%c0_17, %c0_18] : memref<1x1xf32, #tpu.memory_space<smem>>
    } else {
    }
    return
  }
  func.func @transform_0(%arg0: i32) -> (i32, i32) {
    %c0_i32 = arith.constant 0 : i32
    %c0_i32_0 = arith.constant 0 : i32
    return %arg0, %c0_i32 : i32, i32
  }
  func.func @transform_1(%arg0: i32) -> (i32, i32) {
    %c0_i32 = arith.constant 0 : i32
    %c0_i32_0 = arith.constant 0 : i32
    return %arg0, %c0_i32 : i32, i32
  }
  func.func @transform_2(%arg0: i32) -> (i32, i32) {
    %c0_i32 = arith.constant 0 : i32
    %c0_i32_0 = arith.constant 0 : i32
    %c0_i32_1 = arith.constant 0 : i32
    return %c0_i32, %c0_i32_0 : i32, i32
  }
}

</mosaic_0001>

<bundles_post_ra>
// kernel: ce_loss_pallas.1
= control target key start
LH: loop header
LB: loop body
LE: loop exit
PB: predicated region body
PF: predicated region fallthrough
CT: control target
= control target key end

     0   :  { %vm20_vm0 = vcmask 130048   ;;  %s133_s0 = inlined_call_operand.vmem [shape: s32[8,1], index: 0, kind: input, shape index: {}]   ;;  %s134_s1 = inlined_call_operand.vmem [shape: f32[8,16], index: 1, kind: input, shape index: {}]   ;;  %s135_s2 = inlined_call_operand.hbm [shape: f32[1,1], index: 2, kind: output, shape index: {}]  }
   0x1   :  { %v18_v0 = vld [vmem:[%s134_s1] sm:$0xff] }
   0x2   :  { %7 = vsyncpa [#allocation4], 0  ;;  %v21_v1 = vsel %vm20_vm0, %v18_v0, -inf  ;;  %v103_v2 = vmov 0   ;;  %v19_v3 = vld [vmem:[%s133_s0] sm:$0xff]  ;;  %v32_v9 = vlaneseq  ;;  %vm16_vm2 = vcmask 7168  }
   0x3   :  { %84 = vset.pattern.permute.xlu0 %v103_v2  ;;  %v104_v14 = vmov 0.0   ;;  %s69_s13 = sshll.u32 %s135_s2, 4  ;;  %s105_s16 = smov [#allocation3]   ;;  %s70_s13 = int_to_ptr.hbm [resolvable:$true] %s69_s13 }
   0x4   :  { %22 = vmax.xlane.f32.xlu0 %v21_v1  ;;  %v33_v10 = vand.u32 127, %v32_v9  ;;  %17 = vst.msk [vmem:[#allocation2] sm:$0xff] %vm16_vm2, %v104_v14 }
   0xb   :  { %v42_v19 = vld [vmem:[#allocation2] sm:$0xff] }
  0x18   :  { %35 = vperm.xlu0 %84, %v19_v3  }
  0x77   :  { %v23_v4 = vpop.xlane.xlu0 %22 }
  0x78   :  { %v24_v5 = vsub.f32 %v18_v0, %v23_v4 }
  0x7a   :  { %v25_v6 = vmul.f32 1.442695, %v24_v5 }
  0x7c   :  { %85 = vpow2.f32 %v25_v6 }
  0x82   :  { %v86_v7 = vpop.eup %85 }
  0x83   :  { %v27_v8 = vsel %vm20_vm0, %v86_v7, 0.0 }
  0x84   :  { %28 = vadd.xlane.f32.xlu1 %v27_v8 }
  0x8a   :  { %v36_v11 = vpop.permute.xlu0 %35 }
  0x8b   :  { %vm37_vm1 = vcmp.eq.s32.totalorder %v33_v10, %v36_v11 }
  0x8c   :  { %v38_v12 = vsel %vm37_vm1, %v24_v5, 0.0 }
  0x8d   :  { %v39_v13 = vsel %vm20_vm0, %v38_v12, 0.0 }
  0x8e   :  { %40 = vadd.xlane.f32.xlu1 %v39_v13 }
  0xf7   :  { %v29_v15 = vpop.xlane.xlu1 %28 }
  0xf8   :  { %87 = vlog2.f32 %v29_v15 }
  0xfe   :  { %v88_v16 = vpop.eup %87 }
  0xff   :  { %v31_v17 = vmul.f32 0.6931472, %v88_v16 }
 0x101   :  { %v41_v18 = vpop.xlane.xlu1 %40 }
 0x102   :  { %v43_v20 = vsub.f32 %v31_v17, %v41_v18 }
 0x104   :  { %v44_v21 = vadd.f32 %v43_v20, %v42_v19 }
 0x106   :  { %46 = vst.msk [vmem:[#allocation2] sm:$0xff] %vm16_vm2, %v44_v21 }
 0x10d   :  { %v50_v22 = vld [vmem:[#allocation2] sm:$0xff] }
 0x10e   :  { %v51_v23 = vsel %vm16_vm2, %v50_v22, 0.0 }
 0x10f   :  { %52 = vadd.xlane.f32.xlu2 %v51_v23 }
 0x182   :  { %v53_v24 = vpop.xlane.xlu2 %52 }
 0x183   :  { %v54_v25 = vrot.slane %v53_v24, 4 }
 0x185   :  { %v55_v26 = vadd.f32 %v54_v25, %v53_v24 }
 0x187   :  { %v56_v27 = vrot.slane %v55_v26, 2 }
 0x189   :  { %v57_v28 = vadd.f32 %v56_v27, %v55_v26 }
 0x18b   :  { %v58_v29 = vrot.slane %v57_v28, 1 }
 0x18d   :  { %v59_v30 = vadd.f32 %v58_v29, %v57_v28 }
 0x18f   :  { %79 = vpush %v59_v30 }
 0x1c0   :  { %s80_s14 = spop %79 }
 0x1c1   :  { %s61_s15 = smul.f32 0.125, %s80_s14 }
 0x1c3   :  { %63 = sst [smem:[#allocation3]] %s61_s15 }
 0x1c4   :  { %72 = dma.smem_to_hbm %s105_s16, 16, %s70_s13, [#allocation4]  }
 0x1c5   :  { %101 = dma.done.wait [#allocation4], 16  }
 0x1c6   :  { %102 = vsyncadd [#allocation4], 4294967280 }
 0x1c7   :  { %77 = sfence }
 0x1c8   :  { %78 = vsyncpa [#allocation4], 1 }

</bundles_post_ra>
